<compile_context>
chip_gen: v6e
topology: v6e:2x2x1
jax: 0.10.0
libtpu: 0.0.40
codegen_flags: <defaults>
</compile_context>

<pallas_src>
import jax
import jax.numpy as jnp
from jax import lax
from jax.experimental import pallas as pl
from jax.experimental.pallas import tpu as pltpu

_LANE = 128


def _round_up(x, m):
    return ((x + m - 1) // m) * m


def _cdiv(a, b):
    return (a + b - 1) // b


# ----------------------------- kernel bodies --------------------------------

def _coord_head_kernel(x_ref, wt_ref, b_ref, o_ref):
    """Common path: whole channel axis per tile -> no scratch, no pl.when."""
    # x_ref: (tile_m, C_eff); wt_ref: (N_eff, C_eff) lane-dense; b_ref: (1, N_eff)
    acc = lax.dot_general(
        x_ref[...], wt_ref[...],
        dimension_numbers=(((1,), (1,)), ((), ())),
        preferred_element_type=jnp.float32)
    o_ref[...] = (acc + b_ref[...].astype(jnp.float32)).astype(o_ref.dtype)


def _coord_head_kernel_ksplit(x_ref, wt_ref, b_ref, o_ref, acc_ref):
    """Fallback for very wide channel axes: contraction split over grid axis 1."""
    k = pl.program_id(1)

    @pl.when(k == 0)
    def _init():
        acc_ref[...] = jnp.zeros_like(acc_ref)

    acc_ref[...] += lax.dot_general(
        x_ref[...], wt_ref[...],
        dimension_numbers=(((1,), (1,)), ((), ())),
        preferred_element_type=jnp.float32)

    @pl.when(k == pl.num_programs(1) - 1)
    def _finalize():
        o_ref[...] = (acc_ref[...] + b_ref[...].astype(jnp.float32)).astype(o_ref.dtype)


# ------------------------------ tile sizing ---------------------------------

def _tpu_params():
    """(vmem_limit_bytes, stream_budget_bytes, multi_tc) per chip generation."""
    vmem_cap = 64 * 1024 * 1024  # conservative default (v7x per-TC physical)
    try:
        info = pltpu.get_tpu_info()
        vmem_cap = int(getattr(info, "vmem_capacity_bytes", vmem_cap))
    except Exception:
        pass
    if vmem_cap >= 100 * 1024 * 1024:
        # v5e / v6e: 128 MiB physical VMEM, single TensorCore per chip.
        return 64 * 1024 * 1024, 48 * 1024 * 1024, False
    # v7x (or unknown): 64 MiB physical per TC, 2 TensorCores -> keep 32 MiB scoped.
    return 32 * 1024 * 1024, 22 * 1024 * 1024, True


def _choose_tiles(M_eff, C_eff, N_eff, itemsize, stream_budget, granule, multi_tc):
    """Byte-sized (tile_m, tile_k), modelling lane padding of every VMEM buffer."""

    def x_row(tk):  # double-buffered x tile bytes per row (lane-padded)
        return 2 * _round_up(tk, _LANE) * itemsize

    out_row = 2 * _round_up(N_eff, _LANE) * itemsize  # double-buffered out tile

    tile_k = C_eff
    if stream_budget // (x_row(C_eff) + out_row) < granule:
        # Channel axis absurdly wide: split the contraction, but only on an
        # exact, lane-aligned divisor so K never needs in-kernel masking.
        for cand in (8192, 4096, 2048, 1024, 512, 256, 128):
            if C_eff % cand == 0 and stream_budget // (x_row(cand) + out_row) >= granule:
                tile_k = cand
                break

    per_row = x_row(tile_k) + out_row
    if tile_k != C_eff:
        per_row += _round_up(N_eff, _LANE) * 4  # f32 accumulator scratch
    tile_m = max(granule, (stream_budget // per_row) // granule * granule)
    tile_m = min(tile_m, M_eff)

    if multi_tc and tile_k == C_eff:
        # Two TensorCores: ensure the "parallel" M axis has >=2 steps per core
        # so prologue/epilogue DMAs are hidden.  Skip for tiny problems where
        # the extra ~0.35us/step overhead is not worth it.
        total_x_bytes = M_eff * _round_up(C_eff, _LANE) * itemsize
        if total_x_bytes >= (1 << 20):
            want = 8 if total_x_bytes >= (16 << 20) else 4
            if _cdiv(M_eff, tile_m) < want:
                tile_m = min(M_eff, _round_up(_cdiv(M_eff, want), granule))
    return tile_m, tile_k


# -------------------------------- wrapper ------------------------------------

@jax.jit
def coord_head(x, weight, bias):
    """CoordHead forward: y = x @ weight.T + bias.

    Args:
      x:      [B, N, C] activations.
      weight: [2, C]  nn.Linear weight, PyTorch (out_features, in_features) layout.
      bias:   [2]     nn.Linear bias.
    Returns:
      [B, N, 2]
    """
    B, N, C = x.shape
    M = B * N
    itemsize = x.dtype.itemsize
    granule = max(8, 32 // itemsize)  # sublane granule: 8 f32 / 16 bf16 / 32 int8

    # ---- Small-C lane folding: make the streamed operand lane-dense ---------
    g = 1
    if C < _LANE and _LANE % C == 0:
        g = _LANE // C
        while g > 1 and M % g != 0:  # the reshape must stay a free bitcast
            g //= 2
    M_eff, C_eff, N_eff = M // g, g * C, 2 * g

    x_eff = x.reshape(M_eff, C_eff)  # free: contiguous row-major
    if g > 1:
        # Block-diagonal weight, already in lane-dense (N_eff, C_eff) layout:
        # wt_eff[2j+o, j*C+c] = weight[o, c], zero elsewhere.
        eye = jnp.eye(g, dtype=weight.dtype)
        wt_eff = jnp.einsum("jk,oc->jokc", eye, weight).reshape(N_eff, C_eff)
        b_eff = jnp.tile(bias, g).reshape(1, N_eff)
    else:
        wt_eff = weight                      # (2, C) lane-dense
        b_eff = bias.reshape(1, N_eff)

    # ---- Tiling --------------------------------------------------------------
    vmem_limit, stream_budget, multi_tc = _tpu_params()
    w_itemsize = wt_eff.dtype.itemsize
    w_sub = max(8, 32 // w_itemsize)
    reserve = (2 * _round_up(N_eff, w_sub) * _round_up(C_eff, _LANE) * w_itemsize
               + (64 << 10))  # resident weight buffers + bias/misc
    min_budget = granule * (2 * _round_up(C_eff, _LANE)
                            + 2 * _round_up(N_eff, _LANE)) * itemsize
    stream_budget = max(min_budget, stream_budget - reserve)

    tile_m, tile_k = _choose_tiles(M_eff, C_eff, N_eff, itemsize,
                                   stream_budget, granule, multi_tc)
    num_m = _cdiv(M_eff, tile_m)

    if tile_k == C_eff:
        kernel = _coord_head_kernel
        grid_spec = pltpu.PrefetchScalarGridSpec(
            num_scalar_prefetch=0,
            grid=(num_m,),
            in_specs=[
                pl.BlockSpec((tile_m, C_eff), lambda i: (i, 0)),  # x stream
                pl.BlockSpec((N_eff, C_eff), lambda i: (0, 0)),   # weight (resident)
                pl.BlockSpec((1, N_eff), lambda i: (0, 0)),       # bias (resident)
            ],
            out_specs=pl.BlockSpec((tile_m, N_eff), lambda i: (i, 0)),
        )
        dim_sem = ("parallel",)
    else:
        kernel = _coord_head_kernel_ksplit
        num_k = C_eff // tile_k
        grid_spec = pltpu.PrefetchScalarGridSpec(
            num_scalar_prefetch=0,
            grid=(num_m, num_k),
            in_specs=[
                pl.BlockSpec((tile_m, tile_k), lambda i, k: (i, k)),  # x stream
                pl.BlockSpec((N_eff, tile_k), lambda i, k: (0, k)),   # weight slab
                pl.BlockSpec((1, N_eff), lambda i, k: (0, 0)),        # bias
            ],
            out_specs=pl.BlockSpec((tile_m, N_eff), lambda i, k: (i, 0)),
            scratch_shapes=[pltpu.VMEM((tile_m, N_eff), jnp.float32)],
        )
        dim_sem = ("parallel", "arbitrary")

    out2d = pl.pallas_call(
        kernel,
        out_shape=jax.ShapeDtypeStruct((M_eff, N_eff), x.dtype),
        grid_spec=grid_spec,
        compiler_params=pltpu.CompilerParams(
            dimension_semantics=dim_sem,
            vmem_limit_bytes=vmem_limit,
        ),
    )(x_eff, wt_eff, b_eff)

    # Unfold: (M/g, 2g) -> (M, 2) is a free contiguous reshape.
    return out2d.reshape(B, N, 2)


# --------------------------------- demo --------------------------------------

if __name__ == "__main__":
    key = jax.random.PRNGKey(0)
    kx, kw, kb, kx2, kx3, kw3 = jax.random.split(key, 6)

    def reference(x, w, b):
        return (jnp.einsum("bnc,oc->bno", x, w,
                           precision=jax.lax.Precision.HIGHEST) + b)

    # Loose tolerance: real wiring bugs give O(1) errors, while MXU matmul
    # precision modes can differ from the XLA reference by up to ~1e-3.
    ATOL = RTOL = 1e-2

    # 1) Module-consistent small shapes: batch=2, tokens=8, channels=32
    #    (exercises the lane-folding path, g = 4).
    B, N, C = 2, 8, 32
    x = jax.random.normal(kx, (B, N, C), dtype=jnp.float32)
    w = jax.random.normal(kw, (2, C), dtype=jnp.float32) * (1.0 / jnp.sqrt(C))
    b = jax.random.normal(kb, (2,), dtype=jnp.float32) * 0.01

    out = jax.block_until_ready(coord_head(x, w, b))
    ref = reference(x, w, b)
    assert out.shape == (B, N, 2), out.shape
    assert out.dtype == jnp.float32
    err = float(jnp.max(jnp.abs(out - ref)))
    assert jnp.allclose(out, ref, atol=ATOL, rtol=RTOL), f"max abs err {err}"

    # 2) Larger token count on the folded path (M = 2200, still one/few tiles).
    B2, N2 = 2, 1100
    x2 = jax.random.normal(kx2, (B2, N2, C), dtype=jnp.float32)
    out2 = jax.block_until_ready(coord_head(x2, w, b))
    ref2 = reference(x2, w, b)
    assert out2.shape == (B2, N2, 2), out2.shape
    err2 = float(jnp.max(jnp.abs(out2 - ref2)))
    assert jnp.allclose(out2, ref2, atol=ATOL, rtol=RTOL), f"max abs err {err2}"

    # 3) C >= 128 path (no folding, lane-dense (2, C) resident weight).
    B3, N3, C3 = 2, 600, 256
    x3 = jax.random.normal(kx3, (B3, N3, C3), dtype=jnp.float32)
    w3 = jax.random.normal(kw3, (2, C3), dtype=jnp.float32) * (1.0 / jnp.sqrt(C3))
    out3 = jax.block_until_ready(coord_head(x3, w3, b))
    ref3 = reference(x3, w3, b)
    assert out3.shape == (B3, N3, 2), out3.shape
    err3 = float(jnp.max(jnp.abs(out3 - ref3)))
    assert jnp.allclose(out3, ref3, atol=ATOL, rtol=RTOL), f"max abs err {err3}"

    print("KERNEL_OK")
</pallas_src>

<mosaic_0001>
module attributes {stable_mosaic.version = 11 : i64} {
  func.func @_coord_head_kernel(%arg0: i32, %arg1: memref<4x128xf32, #tpu.memory_space<vmem>>, %arg2: memref<8x128xf32, #tpu.memory_space<vmem>>, %arg3: memref<1x8xf32, #tpu.memory_space<vmem>>, %arg4: memref<4x8xf32, #tpu.memory_space<vmem>>) attributes {dimension_semantics = [#tpu.dimension_semantics<parallel>], iteration_bounds = array<i64: 1>, scalar_prefetch = 0 : i64, scratch_operands = 0 : i64, tpu.core_type = #tpu.core_type<tc>, window_params = [{transform_indices = @transform_0, window_bounds = array<i64: 4, 128>}, {pipeline_mode = #tpu.pipeline_mode<synchronous>, transform_indices = @transform_1, window_bounds = array<i64: 8, 128>}, {pipeline_mode = #tpu.pipeline_mode<synchronous>, transform_indices = @transform_2, window_bounds = array<i64: 1, 8>}, {transform_indices = @transform_3, window_bounds = array<i64: 4, 8>}]} {
    %c0 = arith.constant 0 : index
    %c0_0 = arith.constant 0 : index
    %0 = vector.load %arg1[%c0, %c0_0] : memref<4x128xf32, #tpu.memory_space<vmem>>, vector<4x128xf32>
    %c0_1 = arith.constant 0 : index
    %c0_2 = arith.constant 0 : index
    %1 = vector.load %arg2[%c0_1, %c0_2] : memref<8x128xf32, #tpu.memory_space<vmem>>, vector<8x128xf32>
    %cst = arith.constant dense<0.000000e+00> : vector<4x8xf32>
    %2 = tpu.matmul %0, %1, %cst {dimension_numbers = #tpu.dot_dimension_numbers<[1], [1], [0], [0], [0, 0, 1, 0], [], []>} : vector<4x128xf32>, vector<8x128xf32>, vector<4x8xf32> -> vector<4x8xf32>
    %c0_3 = arith.constant 0 : index
    %c0_4 = arith.constant 0 : index
    %3 = vector.load %arg3[%c0_3, %c0_4] : memref<1x8xf32, #tpu.memory_space<vmem>>, vector<1x8xf32>
    %4 = vector.broadcast %3 : vector<1x8xf32> to vector<4x8xf32>
    %5 = arith.addf %2, %4 : vector<4x8xf32>
    %c0_5 = arith.constant 0 : index
    %c0_6 = arith.constant 0 : index
    %6 = vector.load %arg4[%c0_5, %c0_6] : memref<4x8xf32, #tpu.memory_space<vmem>>, vector<4x8xf32>
    tpu.vector_store %arg4[%c0_5, %c0_6], %5 {strides = array<i32>} : memref<4x8xf32, #tpu.memory_space<vmem>>, vector<4x8xf32>,
    return
  }
  func.func @transform_0(%arg0: i32) -> (i32, i32) {
    %c0_i32 = arith.constant 0 : i32
    %c0_i32_0 = arith.constant 0 : i32
    return %arg0, %c0_i32 : i32, i32
  }
  func.func @transform_1(%arg0: i32) -> (i32, i32) {
    %c0_i32 = arith.constant 0 : i32
    %c0_i32_0 = arith.constant 0 : i32
    %c0_i32_1 = arith.constant 0 : i32
    return %c0_i32, %c0_i32_0 : i32, i32
  }
  func.func @transform_2(%arg0: i32) -> (i32, i32) {
    %c0_i32 = arith.constant 0 : i32
    %c0_i32_0 = arith.constant 0 : i32
    %c0_i32_1 = arith.constant 0 : i32
    return %c0_i32, %c0_i32_0 : i32, i32
  }
  func.func @transform_3(%arg0: i32) -> (i32, i32) {
    %c0_i32 = arith.constant 0 : i32
    %c0_i32_0 = arith.constant 0 : i32
    return %arg0, %c0_i32 : i32, i32
  }
}

</mosaic_0001>

<bundles_post_ra>
// kernel: tile.8
= control target key start
LH: loop header
LB: loop body
LE: loop exit
PB: predicated region body
PF: predicated region fallthrough
CT: control target
= control target key end

     0   :  { %s22_s0 = inlined_call_operand.vmem [shape: f32[2], index: 0, kind: input, shape index: {}]   ;;  %s23_s1 = inlined_call_operand.vmem [shape: f32[4,2], index: 1, kind: output, shape index: {}]  }
   0x1   :  { %v4_v0 = vld [vmem:[%s22_s0] ss:$0 sm:$0xff] }
   0x2   :  { %5 = vst [vmem:[%s23_s1] sm:$0xf] %v4_v0 }

// kernel: tile.9
= control target key start
LH: loop header
LB: loop body
LE: loop exit
PB: predicated region body
PF: predicated region fallthrough
CT: control target
= control target key end

     0   :  { %vm8_vm0 = vcmask 15360   ;;  %s40_s8 = smov 2   ;;  %s41_s9 = smov 4   ;;  %vm14_vm1 = vcmask 64560   ;;  %vm20_vm2 = vcmask 48160   ;;  %vm26_vm3 = vcmask 31760   ;;  %s58_s0 = inlined_call_operand.vmem [shape: f32[4,2], index: 0, kind: input, shape index: {}]   ;;  %s59_s1 = inlined_call_operand.vmem [shape: f32[1,8], index: 1, kind: output, shape index: {}]  }
   0x1   :  { %v5_v0 = vld [vmem:[%s58_s0] sm:$0xf]  ;;  %s39_s0 = smov 6  }
   0x2   :  { %6 = vst [vmem:[#allocation1] sm:$0xf] %v5_v0 }
   0x9   :  { %v11_v1 = vld [vmem:[#allocation1 + $0x3] sm:$0x1]   ;;  %v23_v2 = vld [vmem:[#allocation1 + $0x1] sm:$0x1]   ;;  %v7_v3 = vld [vmem:[#allocation1] sm:$0x1]  }
   0xa   :  { %12 = vrot.lane.b32.xlu0 %v11_v1, %s39_s0  ;;  %24 = vrot.lane.b32.xlu1 %v23_v2, %s40_s8  ;;  %v17_v4 = vld [vmem:[#allocation1 + $0x2] sm:$0x1]   ;;  %9 = vst.msk [vmem:[#allocation0] sm:$0x1] %vm8_vm0, %v7_v3  }
   0xe   :  { %18 = vrot.lane.b32.xlu0 %v17_v4, %s41_s9 }
  0x7c   :  { %v13_v5 = vpop.permute.xlu0 %12   ;;  %v25_v6 = vpop.permute.xlu1 %24  }
  0x7d   :  { %15 = vst.msk [vmem:[#allocation0] sm:$0x1] %vm14_vm1, %v13_v5  }
  0x80   :  { %v19_v7 = vpop.permute.xlu0 %18  }
  0x81   :  { %21 = vst.msk [vmem:[#allocation0] sm:$0x1] %vm20_vm2, %v19_v7  }
  0x82   :  { %27 = vst.msk [vmem:[#allocation0] sm:$0x1] %vm26_vm3, %v25_v6  }
  0x89   :  { %v32_v8 = vld [vmem:[#allocation0] sm:$0x1] }
  0x8a   :  { %35 = vst [vmem:[%s59_s1] sm:$0x1] %v32_v8 }

// kernel: coord_head.1
= control target key start
LH: loop header
LB: loop body
LE: loop exit
PB: predicated region body
PF: predicated region fallthrough
CT: control target
= control target key end

     0   :  { %v109_v0 = vmov 0.0   ;;  %vm110_vm0 = vmmov 0   ;;  %vm93_vm1 = vcmask 60416   ;;  %s143_s1 = inlined_call_operand.vmem [shape: f32[8,128], index: 1, kind: input, shape index: {}]   ;;  %s144_s0 = inlined_call_operand.vmem [shape: f32[4,128], index: 0, kind: input, shape index: {}]   ;;  %s145_s2 = inlined_call_operand.vmem [shape: f32[1,8], index: 2, kind: input, shape index: {}]   ;;  %s146_s3 = inlined_call_operand.vmem [shape: f32[4,8], index: 3, kind: output, shape index: {}]  }
   0x1   :  { %102 = vmatprep.subr.mxu0 %v109_v0  ;;  %v15_v1 = vld [vmem:[%s143_s1] sm:$0xff]  ;;  %104 = vmatprep.mubr.msk.f32.mxu0 %vm110_vm0, %v109_v0 }
   0x2   :  { %103 = vmatpush3.xpose.msra.mxu0 %v15_v1  ;;  %v14_v2 = vld [vmem:[%s144_s0] sm:$0xf] }
   0x3   :  { %v99_v3 = vld [vmem:[%s145_s2] ss:$0 sm:$0xff] }
   0x5   :  { %105 = vmatmul.mubr.f32.vlgmr.msra.gmra.mxu0 %v14_v2 }
  0xc5   :  { %v89_v4 = vpop.f32.mrf.mxu0 }
  0xc6   :  { %v90_v5 = vadd.f32 %v99_v3, %v89_v4 }
  0xc7   :  { %v106_v6 = vpop.f32.mrf.mxu0 }
  0xc8   :  { %94 = vst.msk [vmem:[%s146_s3] sm:$0xf] %vm93_vm1, %v90_v5 }

</bundles_post_ra>
